<compile_context>
chip_gen: v7x
topology: tpu7x:2x2x1
jax: 0.10.0
libtpu: 0.0.40
codegen_flags: <defaults>
</compile_context>

<pallas_src>
import jax
import jax.numpy as jnp
from jax.experimental import pallas as pl
from jax.experimental.pallas import tpu as pltpu


def pffm_kernel(x_last, x_m2, x_m3,            # pixel tiles   (C, TP) each
                wp, bp,                        # process_conv  (C, C), (C, 1)
                w0a, w0b, b0,                  # convs[0]      (C, C) x2, (C, 1)
                w1a, w1b, b1,                  # convs[1]      (C, C) x2, (C, 1)
                wfa, wfb, wfc, bf,             # fusion        (3C, C) x3, (3C, 1)
                out_ref):                      # output tile   (3C, TP)
    xl = x_last[...]
    x2 = x_m2[...]
    x3 = x_m3[...]
    cdt = xl.dtype                              # compute (I/O) dtype, f32 or bf16

    # f0 = process_conv(feats[-1])                       -- f32 accumulator
    f0 = jnp.dot(wp[...], xl, preferred_element_type=jnp.float32) + bp[...]
    f0c = f0.astype(cdt)                                  # no-op when cdt == f32

    # f1 = ReLU(conv0(cat([f0, feats[-2]])))  == ReLU(w0a@f0 + w0b@x2 + b0)
    f1 = jnp.maximum(
        jnp.dot(w0a[...], f0c, preferred_element_type=jnp.float32)
        + jnp.dot(w0b[...], x2, preferred_element_type=jnp.float32)
        + b0[...], 0.0)
    f1c = f1.astype(cdt)

    # f2 = ReLU(conv1(cat([f1, feats[-3]])))  == ReLU(w1a@f1 + w1b@x3 + b1)
    f2 = jnp.maximum(
        jnp.dot(w1a[...], f1c, preferred_element_type=jnp.float32)
        + jnp.dot(w1b[...], x3, preferred_element_type=jnp.float32)
        + b1[...], 0.0)
    f2c = f2.astype(cdt)

    # out = fusion(cat([f0, f1, f2]))  == wfa@f0 + wfb@f1 + wfc@f2 + bf
    out = (jnp.dot(wfa[...], f0c, preferred_element_type=jnp.float32)
           + jnp.dot(wfb[...], f1c, preferred_element_type=jnp.float32)
           + jnp.dot(wfc[...], f2c, preferred_element_type=jnp.float32)
           + bf[...])
    out_ref[...] = out.astype(out_ref.dtype)


def pffm_cell_pallas(feats, params, *, tile_p=512,
                     compute_dtype=jnp.bfloat16, out_dtype=jnp.float32):
    """feats: list of 3 arrays (N, C, H, W), ordered like the PyTorch module
    (feats[-1] is processed first).  Returns (N, 3C, H, W) in out_dtype."""
    assert len(feats) == 3, "this kernel implements layers == 3"
    N, C, H, W = feats[0].shape
    HW = H * W

    # --- pixel-tile sizing --------------------------------------------------
    # Lane axis = H*W.  Keep tile_p a multiple of 128 (unmasked lane-dense
    # stores) and keep double-buffered pixel tiles well under the v7x scoped
    # VMEM budget (32 MiB default scoped / 64 MiB physical); weights are tiny.
    in_bytes = jnp.dtype(compute_dtype).itemsize
    ob = jnp.dtype(out_dtype).itemsize
    vmem_budget = 16 * 1024 * 1024            # ~half of v7x scoped default
    if HW <= tile_p:
        tile_p = HW                           # single block == full dim (legal)
    else:
        tile_p = max(128, (tile_p // 128) * 128)
        while tile_p > 128 and 2 * tile_p * 3 * C * (in_bytes + ob) > vmem_budget:
            tile_p -= 128
    grid = (N, pl.cdiv(HW, tile_p))

    # --- operand prep (no HBM transposes: NCHW -> (N, C, H*W) is free) ------
    cdt = compute_dtype
    x_last = feats[-1].reshape(N, C, HW).astype(cdt)
    x_m2 = feats[-2].reshape(N, C, HW).astype(cdt)
    x_m3 = feats[-3].reshape(N, C, HW).astype(cdt)

    wp, bp, w0, b0, w1, b1, wf, bf = params   # weights stored (Cin, Cout)
    # kernel wants (Cout, Cin); pre-slice so no channel concat is needed inside
    wp_t = wp.T.astype(cdt)
    w0a = w0[:C].T.astype(cdt)
    w0b = w0[C:].T.astype(cdt)
    w1a = w1[:C].T.astype(cdt)
    w1b = w1[C:].T.astype(cdt)
    wfa = wf[:C].T.astype(cdt)
    wfb = wf[C:2 * C].T.astype(cdt)
    wfc = wf[2 * C:].T.astype(cdt)
    # biases stay f32 (added to the f32 accumulator), shape (Cout, 1) so they
    # broadcast along the lane (pixel) axis.
    bp_c = bp.reshape(C, 1).astype(jnp.float32)
    b0_c = b0.reshape(C, 1).astype(jnp.float32)
    b1_c = b1.reshape(C, 1).astype(jnp.float32)
    bf_c = bf.reshape(3 * C, 1).astype(jnp.float32)

    # batch dim squeezed out of the kernel view (None in block_shape)
    pix_spec = lambda c: pl.BlockSpec((None, c, tile_p), lambda n, i: (n, 0, i))
    w_spec = lambda r, c: pl.BlockSpec((r, c), lambda n, i: (0, 0))
    # TODO(synk): for large C on v7x, add pipeline_mode=pl.Buffered(1) to the
    #             (constant-index) weight specs to drop the redundant second
    #             weight buffer from VMEM; at small C it is not worth the risk.

    out = pl.pallas_call(
        pffm_kernel,
        out_shape=jax.ShapeDtypeStruct((N, 3 * C, HW), out_dtype),
        grid_spec=pl.GridSpec(
            grid=grid,
            in_specs=[
                pix_spec(C), pix_spec(C), pix_spec(C),
                w_spec(C, C), w_spec(C, 1),
                w_spec(C, C), w_spec(C, C), w_spec(C, 1),
                w_spec(C, C), w_spec(C, C), w_spec(C, 1),
                w_spec(3 * C, C), w_spec(3 * C, C), w_spec(3 * C, C),
                w_spec(3 * C, 1),
            ],
            out_specs=pix_spec(3 * C),
        ),
        compiler_params=pltpu.CompilerParams(
            dimension_semantics=("parallel", "parallel"),
            vmem_limit_bytes=32 * 1024 * 1024,
        ),
    )(x_last, x_m2, x_m3, wp_t, bp_c, w0a, w0b, b0_c, w1a, w1b, b1_c,
      wfa, wfb, wfc, bf_c)

    # (N, 3C, H*W) -> (N, 3C, H, W): free reshape, output already channel-major
    return out.reshape(N, 3 * C, H, W)


def pffm_cell_ref(feats, params):
    """Pure-JAX reference matching the PyTorch forward (layers == 3)."""
    wp, bp, w0, b0, w1, b1, wf, bf = params

    def conv1x1(x, w, b):  # x: (N, Cin, H, W); w: (Cin, Cout); b: (1, Cout)
        y = jnp.einsum('nchw,cd->ndhw', x, w)
        return y + b.reshape(1, -1, 1, 1)

    f0 = conv1x1(feats[-1], wp, bp)
    f1 = jax.nn.relu(conv1x1(jnp.concatenate([f0, feats[-2]], axis=1), w0, b0))
    f2 = jax.nn.relu(conv1x1(jnp.concatenate([f1, feats[-3]], axis=1), w1, b1))
    return conv1x1(jnp.concatenate([f0, f1, f2], axis=1), wf, bf)


def make_params(key, C):
    """Deterministic synthetic weights (stored as (Cin, Cout) matrices)."""
    ks = jax.random.split(key, 8)
    scale = 0.1
    wp = scale * jax.random.normal(ks[0], (C, C), jnp.float32)
    bp = scale * jax.random.normal(ks[1], (1, C), jnp.float32)
    w0 = scale * jax.random.normal(ks[2], (2 * C, C), jnp.float32)
    b0 = scale * jax.random.normal(ks[3], (1, C), jnp.float32)
    w1 = scale * jax.random.normal(ks[4], (2 * C, C), jnp.float32)
    b1 = scale * jax.random.normal(ks[5], (1, C), jnp.float32)
    wf = scale * jax.random.normal(ks[6], (3 * C, 3 * C), jnp.float32)
    bf = scale * jax.random.normal(ks[7], (1, 3 * C), jnp.float32)
    return (wp, bp, w0, b0, w1, b1, wf, bf)


if __name__ == "__main__":
    key = jax.random.PRNGKey(0)
    C, layers = 8, 3
    N, H, W = 2, 16, 16

    kf, kp = jax.random.split(key)
    feat_keys = jax.random.split(kf, layers)
    feats = [jax.random.normal(k, (N, C, H, W), jnp.float32) for k in feat_keys]
    params = make_params(kp, C)

    # 1) f32 path: strict check against the pure-JAX reference.
    out_f32 = pffm_cell_pallas(feats, params, tile_p=512,
                               compute_dtype=jnp.float32)
    out_f32 = jax.block_until_ready(out_f32)
    ref = pffm_cell_ref(feats, params)
    assert out_f32.shape == (N, layers * C, H, W)
    assert jnp.allclose(out_f32, ref, atol=1e-4, rtol=1e-4), "f32 mismatch"

    # 2) bf16-I/O (bandwidth-optimized) path: compare against a reference fed
    #    the same bf16-rounded activations/weights (biases kept f32, matching
    #    the kernel, which keeps bias-add/ReLU in the f32 accumulator).
    out_bf = pffm_cell_pallas(feats, params, tile_p=512,
                              compute_dtype=jnp.bfloat16)
    out_bf = jax.block_until_ready(out_bf)

    def rb(x):  # round-trip through bf16
        return x.astype(jnp.bfloat16).astype(jnp.float32)

    wp, bp, w0, b0, w1, b1, wf, bf = params
    params_r = (rb(wp), bp, rb(w0), b0, rb(w1), b1, rb(wf), bf)
    feats_r = [rb(f) for f in feats]
    ref_bf = pffm_cell_ref(feats_r, params_r)
    assert jnp.allclose(out_bf, ref_bf, atol=3e-2, rtol=3e-2), "bf16 mismatch"

    print("KERNEL_OK")
</pallas_src>

<mosaic_0001>
module attributes {stable_mosaic.version = 11 : i64} {
  func.func @pffm_kernel(%arg0: i32, %arg1: i32, %arg2: memref<1x8x256xf32, #tpu.memory_space<vmem>>, %arg3: memref<1x8x256xf32, #tpu.memory_space<vmem>>, %arg4: memref<1x8x256xf32, #tpu.memory_space<vmem>>, %arg5: memref<8x8xf32, #tpu.memory_space<vmem>>, %arg6: memref<8x1xf32, #tpu.memory_space<vmem>>, %arg7: memref<8x8xf32, #tpu.memory_space<vmem>>, %arg8: memref<8x8xf32, #tpu.memory_space<vmem>>, %arg9: memref<8x1xf32, #tpu.memory_space<vmem>>, %arg10: memref<8x8xf32, #tpu.memory_space<vmem>>, %arg11: memref<8x8xf32, #tpu.memory_space<vmem>>, %arg12: memref<8x1xf32, #tpu.memory_space<vmem>>, %arg13: memref<24x8xf32, #tpu.memory_space<vmem>>, %arg14: memref<24x8xf32, #tpu.memory_space<vmem>>, %arg15: memref<24x8xf32, #tpu.memory_space<vmem>>, %arg16: memref<24x1xf32, #tpu.memory_space<vmem>>, %arg17: memref<1x24x256xf32, #tpu.memory_space<vmem>>) attributes {dimension_semantics = [#tpu.dimension_semantics<parallel>, #tpu.dimension_semantics<parallel>], iteration_bounds = array<i64: 2, 1>, scalar_prefetch = 0 : i64, scratch_operands = 0 : i64, tpu.core_type = #tpu.core_type<tc>, window_params = [{transform_indices = @transform_0, window_bounds = array<i64: 1, 8, 256>}, {transform_indices = @transform_1, window_bounds = array<i64: 1, 8, 256>}, {transform_indices = @transform_2, window_bounds = array<i64: 1, 8, 256>}, {pipeline_mode = #tpu.pipeline_mode<synchronous>, transform_indices = @transform_3, window_bounds = array<i64: 8, 8>}, {pipeline_mode = #tpu.pipeline_mode<synchronous>, transform_indices = @transform_4, window_bounds = array<i64: 8, 1>}, {pipeline_mode = #tpu.pipeline_mode<synchronous>, transform_indices = @transform_5, window_bounds = array<i64: 8, 8>}, {pipeline_mode = #tpu.pipeline_mode<synchronous>, transform_indices = @transform_6, window_bounds = array<i64: 8, 8>}, {pipeline_mode = #tpu.pipeline_mode<synchronous>, transform_indices = @transform_7, window_bounds = array<i64: 8, 1>}, {pipeline_mode = #tpu.pipeline_mode<synchronous>, transform_indices = @transform_8, window_bounds = array<i64: 8, 8>}, {pipeline_mode = #tpu.pipeline_mode<synchronous>, transform_indices = @transform_9, window_bounds = array<i64: 8, 8>}, {pipeline_mode = #tpu.pipeline_mode<synchronous>, transform_indices = @transform_10, window_bounds = array<i64: 8, 1>}, {pipeline_mode = #tpu.pipeline_mode<synchronous>, transform_indices = @transform_11, window_bounds = array<i64: 24, 8>}, {pipeline_mode = #tpu.pipeline_mode<synchronous>, transform_indices = @transform_12, window_bounds = array<i64: 24, 8>}, {pipeline_mode = #tpu.pipeline_mode<synchronous>, transform_indices = @transform_13, window_bounds = array<i64: 24, 8>}, {pipeline_mode = #tpu.pipeline_mode<synchronous>, transform_indices = @transform_14, window_bounds = array<i64: 24, 1>}, {transform_indices = @transform_15, window_bounds = array<i64: 1, 24, 256>}]} {
    %c0 = arith.constant 0 : index
    %c0_0 = arith.constant 0 : index
    %c0_1 = arith.constant 0 : index
    %0 = vector.load %arg2[%c0, %c0_0, %c0_1] : memref<1x8x256xf32, #tpu.memory_space<vmem>>, vector<1x8x256xf32>
    %1 = vector.shape_cast %0 : vector<1x8x256xf32> to vector<8x256xf32>
    %c0_2 = arith.constant 0 : index
    %c0_3 = arith.constant 0 : index
    %c0_4 = arith.constant 0 : index
    %2 = vector.load %arg3[%c0_2, %c0_3, %c0_4] : memref<1x8x256xf32, #tpu.memory_space<vmem>>, vector<1x8x256xf32>
    %3 = vector.shape_cast %2 : vector<1x8x256xf32> to vector<8x256xf32>
    %c0_5 = arith.constant 0 : index
    %c0_6 = arith.constant 0 : index
    %c0_7 = arith.constant 0 : index
    %4 = vector.load %arg4[%c0_5, %c0_6, %c0_7] : memref<1x8x256xf32, #tpu.memory_space<vmem>>, vector<1x8x256xf32>
    %5 = vector.shape_cast %4 : vector<1x8x256xf32> to vector<8x256xf32>
    %c0_8 = arith.constant 0 : index
    %c0_9 = arith.constant 0 : index
    %6 = vector.load %arg5[%c0_8, %c0_9] : memref<8x8xf32, #tpu.memory_space<vmem>>, vector<8x8xf32>
    %cst = arith.constant dense<0.000000e+00> : vector<8x256xf32>
    %7 = tpu.matmul %6, %1, %cst {dimension_numbers = #tpu.dot_dimension_numbers<[1], [0], [0], [1], [0, 0, 1, 1], [], []>} : vector<8x8xf32>, vector<8x256xf32>, vector<8x256xf32> -> vector<8x256xf32>
    %c0_10 = arith.constant 0 : index
    %c0_11 = arith.constant 0 : index
    %8 = vector.load %arg6[%c0_10, %c0_11] : memref<8x1xf32, #tpu.memory_space<vmem>>, vector<8x1xf32>
    %9 = vector.broadcast %8 : vector<8x1xf32> to vector<8x256xf32>
    %10 = arith.addf %7, %9 : vector<8x256xf32>
    %c0_12 = arith.constant 0 : index
    %c0_13 = arith.constant 0 : index
    %11 = vector.load %arg7[%c0_12, %c0_13] : memref<8x8xf32, #tpu.memory_space<vmem>>, vector<8x8xf32>
    %cst_14 = arith.constant dense<0.000000e+00> : vector<8x256xf32>
    %12 = tpu.matmul %11, %10, %cst_14 {dimension_numbers = #tpu.dot_dimension_numbers<[1], [0], [0], [1], [0, 0, 1, 1], [], []>} : vector<8x8xf32>, vector<8x256xf32>, vector<8x256xf32> -> vector<8x256xf32>
    %c0_15 = arith.constant 0 : index
    %c0_16 = arith.constant 0 : index
    %13 = vector.load %arg8[%c0_15, %c0_16] : memref<8x8xf32, #tpu.memory_space<vmem>>, vector<8x8xf32>
    %cst_17 = arith.constant dense<0.000000e+00> : vector<8x256xf32>
    %14 = tpu.matmul %13, %3, %cst_17 {dimension_numbers = #tpu.dot_dimension_numbers<[1], [0], [0], [1], [0, 0, 1, 1], [], []>} : vector<8x8xf32>, vector<8x256xf32>, vector<8x256xf32> -> vector<8x256xf32>
    %15 = arith.addf %12, %14 : vector<8x256xf32>
    %c0_18 = arith.constant 0 : index
    %c0_19 = arith.constant 0 : index
    %16 = vector.load %arg9[%c0_18, %c0_19] : memref<8x1xf32, #tpu.memory_space<vmem>>, vector<8x1xf32>
    %17 = vector.broadcast %16 : vector<8x1xf32> to vector<8x256xf32>
    %18 = arith.addf %15, %17 : vector<8x256xf32>
    %cst_20 = arith.constant 0.000000e+00 : f32
    %19 = vector.broadcast %cst_20 : f32 to vector<8x256xf32>
    %20 = arith.maximumf %18, %19 : vector<8x256xf32>
    %c0_21 = arith.constant 0 : index
    %c0_22 = arith.constant 0 : index
    %21 = vector.load %arg10[%c0_21, %c0_22] : memref<8x8xf32, #tpu.memory_space<vmem>>, vector<8x8xf32>
    %cst_23 = arith.constant dense<0.000000e+00> : vector<8x256xf32>
    %22 = tpu.matmul %21, %20, %cst_23 {dimension_numbers = #tpu.dot_dimension_numbers<[1], [0], [0], [1], [0, 0, 1, 1], [], []>} : vector<8x8xf32>, vector<8x256xf32>, vector<8x256xf32> -> vector<8x256xf32>
    %c0_24 = arith.constant 0 : index
    %c0_25 = arith.constant 0 : index
    %23 = vector.load %arg11[%c0_24, %c0_25] : memref<8x8xf32, #tpu.memory_space<vmem>>, vector<8x8xf32>
    %cst_26 = arith.constant dense<0.000000e+00> : vector<8x256xf32>
    %24 = tpu.matmul %23, %5, %cst_26 {dimension_numbers = #tpu.dot_dimension_numbers<[1], [0], [0], [1], [0, 0, 1, 1], [], []>} : vector<8x8xf32>, vector<8x256xf32>, vector<8x256xf32> -> vector<8x256xf32>
    %25 = arith.addf %22, %24 : vector<8x256xf32>
    %c0_27 = arith.constant 0 : index
    %c0_28 = arith.constant 0 : index
    %26 = vector.load %arg12[%c0_27, %c0_28] : memref<8x1xf32, #tpu.memory_space<vmem>>, vector<8x1xf32>
    %27 = vector.broadcast %26 : vector<8x1xf32> to vector<8x256xf32>
    %28 = arith.addf %25, %27 : vector<8x256xf32>
    %cst_29 = arith.constant 0.000000e+00 : f32
    %29 = vector.broadcast %cst_29 : f32 to vector<8x256xf32>
    %30 = arith.maximumf %28, %29 : vector<8x256xf32>
    %c0_30 = arith.constant 0 : index
    %c0_31 = arith.constant 0 : index
    %31 = vector.load %arg13[%c0_30, %c0_31] : memref<24x8xf32, #tpu.memory_space<vmem>>, vector<24x8xf32>
    %cst_32 = arith.constant dense<0.000000e+00> : vector<24x256xf32>
    %32 = tpu.matmul %31, %10, %cst_32 {dimension_numbers = #tpu.dot_dimension_numbers<[1], [0], [0], [1], [0, 0, 1, 1], [], []>} : vector<24x8xf32>, vector<8x256xf32>, vector<24x256xf32> -> vector<24x256xf32>
    %c0_33 = arith.constant 0 : index
    %c0_34 = arith.constant 0 : index
    %33 = vector.load %arg14[%c0_33, %c0_34] : memref<24x8xf32, #tpu.memory_space<vmem>>, vector<24x8xf32>
    %cst_35 = arith.constant dense<0.000000e+00> : vector<24x256xf32>
    %34 = tpu.matmul %33, %20, %cst_35 {dimension_numbers = #tpu.dot_dimension_numbers<[1], [0], [0], [1], [0, 0, 1, 1], [], []>} : vector<24x8xf32>, vector<8x256xf32>, vector<24x256xf32> -> vector<24x256xf32>
    %35 = arith.addf %32, %34 : vector<24x256xf32>
    %c0_36 = arith.constant 0 : index
    %c0_37 = arith.constant 0 : index
    %36 = vector.load %arg15[%c0_36, %c0_37] : memref<24x8xf32, #tpu.memory_space<vmem>>, vector<24x8xf32>
    %cst_38 = arith.constant dense<0.000000e+00> : vector<24x256xf32>
    %37 = tpu.matmul %36, %30, %cst_38 {dimension_numbers = #tpu.dot_dimension_numbers<[1], [0], [0], [1], [0, 0, 1, 1], [], []>} : vector<24x8xf32>, vector<8x256xf32>, vector<24x256xf32> -> vector<24x256xf32>
    %38 = arith.addf %35, %37 : vector<24x256xf32>
    %c0_39 = arith.constant 0 : index
    %c0_40 = arith.constant 0 : index
    %39 = vector.load %arg16[%c0_39, %c0_40] : memref<24x1xf32, #tpu.memory_space<vmem>>, vector<24x1xf32>
    %40 = vector.broadcast %39 : vector<24x1xf32> to vector<24x256xf32>
    %41 = arith.addf %38, %40 : vector<24x256xf32>
    %c0_41 = arith.constant 0 : index
    %c0_42 = arith.constant 0 : index
    %c0_43 = arith.constant 0 : index
    %42 = vector.load %arg17[%c0_41, %c0_42, %c0_43] : memref<1x24x256xf32, #tpu.memory_space<vmem>>, vector<1x24x256xf32>
    %43 = vector.shape_cast %42 : vector<1x24x256xf32> to vector<24x256xf32>
    %44 = vector.shape_cast %41 : vector<24x256xf32> to vector<1x24x256xf32>
    tpu.vector_store %arg17[%c0_41, %c0_42, %c0_43], %44 {strides = array<i32>} : memref<1x24x256xf32, #tpu.memory_space<vmem>>, vector<1x24x256xf32>,
    return
  }
  func.func @transform_0(%arg0: i32, %arg1: i32) -> (i32, i32, i32) {
    %c0_i32 = arith.constant 0 : i32
    %c0_i32_0 = arith.constant 0 : i32
    return %arg0, %c0_i32, %arg1 : i32, i32, i32
  }
  func.func @transform_1(%arg0: i32, %arg1: i32) -> (i32, i32, i32) {
    %c0_i32 = arith.constant 0 : i32
    %c0_i32_0 = arith.constant 0 : i32
    return %arg0, %c0_i32, %arg1 : i32, i32, i32
  }
  func.func @transform_2(%arg0: i32, %arg1: i32) -> (i32, i32, i32) {
    %c0_i32 = arith.constant 0 : i32
    %c0_i32_0 = arith.constant 0 : i32
    return %arg0, %c0_i32, %arg1 : i32, i32, i32
  }
  func.func @transform_3(%arg0: i32, %arg1: i32) -> (i32, i32) {
    %c0_i32 = arith.constant 0 : i32
    %c0_i32_0 = arith.constant 0 : i32
    %c0_i32_1 = arith.constant 0 : i32
    return %c0_i32, %c0_i32_0 : i32, i32
  }
  func.func @transform_4(%arg0: i32, %arg1: i32) -> (i32, i32) {
    %c0_i32 = arith.constant 0 : i32
    %c0_i32_0 = arith.constant 0 : i32
    %c0_i32_1 = arith.constant 0 : i32
    return %c0_i32, %c0_i32_0 : i32, i32
  }
  func.func @transform_5(%arg0: i32, %arg1: i32) -> (i32, i32) {
    %c0_i32 = arith.constant 0 : i32
    %c0_i32_0 = arith.constant 0 : i32
    %c0_i32_1 = arith.constant 0 : i32
    return %c0_i32, %c0_i32_0 : i32, i32
  }
  func.func @transform_6(%arg0: i32, %arg1: i32) -> (i32, i32) {
    %c0_i32 = arith.constant 0 : i32
    %c0_i32_0 = arith.constant 0 : i32
    %c0_i32_1 = arith.constant 0 : i32
    return %c0_i32, %c0_i32_0 : i32, i32
  }
  func.func @transform_7(%arg0: i32, %arg1: i32) -> (i32, i32) {
    %c0_i32 = arith.constant 0 : i32
    %c0_i32_0 = arith.constant 0 : i32
    %c0_i32_1 = arith.constant 0 : i32
    return %c0_i32, %c0_i32_0 : i32, i32
  }
  func.func @transform_8(%arg0: i32, %arg1: i32) -> (i32, i32) {
    %c0_i32 = arith.constant 0 : i32
    %c0_i32_0 = arith.constant 0 : i32
    %c0_i32_1 = arith.constant 0 : i32
    return %c0_i32, %c0_i32_0 : i32, i32
  }
  func.func @transform_9(%arg0: i32, %arg1: i32) -> (i32, i32) {
    %c0_i32 = arith.constant 0 : i32
    %c0_i32_0 = arith.constant 0 : i32
    %c0_i32_1 = arith.constant 0 : i32
    return %c0_i32, %c0_i32_0 : i32, i32
  }
  func.func @transform_10(%arg0: i32, %arg1: i32) -> (i32, i32) {
    %c0_i32 = arith.constant 0 : i32
    %c0_i32_0 = arith.constant 0 : i32
    %c0_i32_1 = arith.constant 0 : i32
    return %c0_i32, %c0_i32_0 : i32, i32
  }
  func.func @transform_11(%arg0: i32, %arg1: i32) -> (i32, i32) {
    %c0_i32 = arith.constant 0 : i32
    %c0_i32_0 = arith.constant 0 : i32
    %c0_i32_1 = arith.constant 0 : i32
    return %c0_i32, %c0_i32_0 : i32, i32
  }
  func.func @transform_12(%arg0: i32, %arg1: i32) -> (i32, i32) {
    %c0_i32 = arith.constant 0 : i32
    %c0_i32_0 = arith.constant 0 : i32
    %c0_i32_1 = arith.constant 0 : i32
    return %c0_i32, %c0_i32_0 : i32, i32
  }
  func.func @transform_13(%arg0: i32, %arg1: i32) -> (i32, i32) {
    %c0_i32 = arith.constant 0 : i32
    %c0_i32_0 = arith.constant 0 : i32
    %c0_i32_1 = arith.constant 0 : i32
    return %c0_i32, %c0_i32_0 : i32, i32
  }
  func.func @transform_14(%arg0: i32, %arg1: i32) -> (i32, i32) {
    %c0_i32 = arith.constant 0 : i32
    %c0_i32_0 = arith.constant 0 : i32
    %c0_i32_1 = arith.constant 0 : i32
    return %c0_i32, %c0_i32_0 : i32, i32
  }
  func.func @transform_15(%arg0: i32, %arg1: i32) -> (i32, i32, i32) {
    %c0_i32 = arith.constant 0 : i32
    %c0_i32_0 = arith.constant 0 : i32
    return %arg0, %c0_i32, %arg1 : i32, i32, i32
  }
}

</mosaic_0001>

<bundles_post_ra>
// kernel: tpu_custom_call.1
= control target key start
LH: loop header
LB: loop body
LE: loop exit
PB: predicated region body
PF: predicated region fallthrough
CT: control target
= control target key end

     0   :  { %s1949_s0 = inlined_call_operand.vmem [shape: f32[2,8,256], index: 0, kind: input, shape index: {}]   ;;  %s1950_s1 = inlined_call_operand.vmem [shape: f32[2,8,256], index: 1, kind: input, shape index: {}]   ;;  %s1951_s2 = inlined_call_operand.vmem [shape: f32[2,8,256], index: 2, kind: input, shape index: {}]   ;;  %s1952_s3 = inlined_call_operand.vmem [shape: f32[8,8], index: 3, kind: input, shape index: {}]   ;;  %s1953_s4 = inlined_call_operand.vmem [shape: f32[8,1], index: 4, kind: input, shape index: {}]   ;;  %s1954_s5 = inlined_call_operand.vmem [shape: f32[8,8], index: 5, kind: input, shape index: {}]   ;;  %s1955_s6 = inlined_call_operand.vmem [shape: f32[8,8], index: 6, kind: input, shape index: {}]   ;;  %s1956_s7 = inlined_call_operand.vmem [shape: f32[8,1], index: 7, kind: input, shape index: {}]   ;;  %s1957_s8 = inlined_call_operand.vmem [shape: f32[8,8], index: 8, kind: input, shape index: {}]   ;;  %s1958_s9 = inlined_call_operand.vmem [shape: f32[8,8], index: 9, kind: input, shape index: {}]   ;;  %s1959_s10 = inlined_call_operand.vmem [shape: f32[8,1], index: 10, kind: input, shape index: {}]   ;;  %s1960_s11 = inlined_call_operand.vmem [shape: f32[24,8], index: 11, kind: input, shape index: {}]   ;;  %s1961_s12 = inlined_call_operand.vmem [shape: f32[24,8], index: 12, kind: input, shape index: {}]   ;;  %s1962_s13 = inlined_call_operand.vmem [shape: f32[24,8], index: 13, kind: input, shape index: {}]   ;;  %s1963_s14 = inlined_call_operand.vmem [shape: f32[24,1], index: 14, kind: input, shape index: {}]   ;;  %s1964_s15 = inlined_call_operand.hbm [shape: f32[2,24,256], index: 15, kind: output, shape index: {}]  }
   0x1   :  { %1967 = sst [smem:[#allocation8_spill]] %s1949_s0 }
   0x2   :  { %1968 = sst [smem:[#allocation9_spill]] %s1950_s1 }
   0x3   :  { %1969 = sst [smem:[#allocation10_spill]] %s1953_s4 }
   0x4   :  { %20 = vsyncpa [#allocation3], 0 }
   0x5   :  { %22 = vsyncpa [#allocation3 + $0x1], 0  ;;  %s1731_s18 = smov 0   ;;  %s1733_s19 = smov 0  }
   0x6   :  { %s1735_s20 = smov 0   ;;  %s1737_s21 = smov 0  }
   0x7   :  { %s1739_s22 = smov 0   ;;  %s1741_s23 = smov 0  }
   0x8 LB: > { %1970 = sst [smem:[#allocation5_spill]] %s1640_s22  ;;  %s1456_s24 = sadd.s32 4294967295, %s1644_s23   ;;  %s1644_s23 = sphi %s1741_s23, %s28_s23   ;;  %s1640_s22 = sphi %s1739_s22, %s1980_s22   ;;  %s1636_s21 = sphi %s1737_s21, %s1979_s21   ;;  %s1632_s20 = sphi %s1735_s20, %s1983_s20   ;;  %s1628_s19 = sphi %s1733_s19, %s1982_s19   ;;  %s1624_s18 = sphi %s1731_s18, %s1981_s18  }
   0x9   : > { %s1457_s25 = sadd.s32 4294967294, %s1644_s23   ;;  %s40_s26 = sadd.s32 1, %s1640_s22 }
   0xa   : > { %s385_s27 = sadd.s32 1, %s1632_s20  ;;  %p42_p0 = scmp.ge.s32.totalorder %s40_s26, 2 }
   0xb   : > { %p395_p1 = scmp.ne.s32.totalorder %s1632_s20, %s1628_s19  ;;  %p396_p2 = scmp.eq.s32.totalorder %s1456_s24, 1 }
   0xc   : > { %p401_p3 = scmp.ne.s32.totalorder %s1628_s19, %s1624_s18  ;;  %s1985_s26 = smov (%p42_p0, %s40_s26), 0 }
   0xd   : > { %1971 = sst [smem:[#allocation6_spill]] %s1985_s26  ;;  %p1771_p4 = por %p396_p2, %p395_p1 }
   0xe   : > { %p402_p5 = scmp.eq.s32.totalorder %s1457_s25, 1  ;;  %s380_s29 = ssub.s32 %s1640_s22, %s1985_s26 }
   0xf   : > { %p1460_p6 = scmp.ge.s32.totalorder %s1644_s23, 1  ;;  %p383_p7 = scmp.eq.s32.totalorder %s380_s29, 0 }
  0x10   : > { %p1778_p8 = por %p402_p5, %p401_p3  ;;  %p495_p9 = scmp.lt.s32.totalorder %s1644_s23, 3 }
  0x11   : > { %s1784_s16 = scalar_select %p383_p7, %s1632_s20, %s385_s27  }
  0x12   : > { %p496_p10 = pnand %p1460_p6, %p495_p9 }
  0x13   : > { %1974 = sst [smem:[#allocation7_spill]] %s1784_s16  ;;  %p566_p11 = scmp.lt.s32.totalorder (!%p496_p10), %s1636_s21, 1  ;;  %v1646_v1 = vmov (!%p496_p10), 0.0   ;;  %v1647_v2 = vmov (!%p496_p10), 0   ;;  %v834_v3 = vld [vmem:[%s1956_s7] sm:$0xff] (!%p496_p10)  ;;  %vm609_vm0 = vcmask (!%p496_p10), 64512  }
  0x14   : > { %499 = sbr.rel (%p496_p10) target bundleno = 931 (0x3a3), region = 80  ;;  %s1975_s4 = sld [smem:[#allocation10_spill]] (!%p496_p10)  ;;  %677 = vmatprep.mubr.f32.mxu0 (!%p496_p10), %v1646_v1  ;;  %1564 = vset.pattern.permute.xlu0 (!%p496_p10), %v1647_v2  ;;  %v602_v6 = vld [vmem:[%s1952_s3] sm:$0xff] (!%p496_p10)  ;;  %v1296_v7 = vld [vmem:[%s1963_s14 + $0x8] sm:$0xff] (!%p496_p10)  ;;  %v1297_v25 = vld [vmem:[%s1963_s14 + $0x10] sm:$0xff] (!%p496_p10) }
  0x15   : > { %827 = vmatprep.mubr.f32.mxu1 (!%p496_p10), %v1646_v1  ;;  %1565 = vset.pattern.permute.xlu1 (!%p496_p10), %v1647_v2  ;;  %s1976_s0 = sld [smem:[#allocation8_spill]] (!%p496_p10)  ;;  %s1977_s1 = sld [smem:[#allocation9_spill]] (!%p496_p10)  ;;  %v685_v10 = vld [vmem:[%s1955_s6] sm:$0xff] (!%p496_p10)  ;;  %v1005_v36 = vld [vmem:[%s1960_s11 + $0x8] sm:$0xff] (!%p496_p10)  ;;  %v1006_v37 = vld [vmem:[%s1960_s11 + $0x10] sm:$0xff] (!%p496_p10) }
  0x16   : > { %v684_v16 = vld [vmem:[%s1954_s5] sm:$0xff] (!%p496_p10)  ;;  %v1008_v39 = vld [vmem:[%s1961_s12 + $0x8] sm:$0xff] (!%p496_p10)  ;;  %v1009_v40 = vld [vmem:[%s1961_s12 + $0x10] sm:$0xff] (!%p496_p10) }
  0x17   : > { %v845_v21 = vld [vmem:[%s1958_s9] sm:$0xff] (!%p496_p10)  ;;  %v1195_v49 = vld [vmem:[%s1962_s13 + $0x8] sm:$0xff] (!%p496_p10)  ;;  %v1196_v50 = vld [vmem:[%s1962_s13 + $0x10] sm:$0xff] (!%p496_p10) }
  0x18   : > { %v994_v22 = vld [vmem:[%s1959_s10] sm:$0xff] (!%p496_p10) }
  0x19   : > { %997 = vperm.xlu1 (!%p496_p10), %1565, %v994_v22   ;;  %v1004_v23 = vld [vmem:[%s1960_s11] sm:$0xff] (!%p496_p10) }
  0x1a   : > { %v603_v0 = vld [vmem:[%s1975_s4] sm:$0xff] (!%p496_p10)  ;;  %s562_s4 = sand.u32 (!%p496_p10), 1, %s1628_s19  }
  0x1b   : > { %s567_s25 = scalar_select %p566_p11, %s1636_s21, 1  ;;  %606 = vperm.xlu0 %1564, %v603_v0   ;;  %v1295_v24 = vld [vmem:[%s1963_s14] sm:$0xff] }
  0x1c   : > { %v844_v35 = vld [vmem:[%s1957_s8] sm:$0xff]  ;;  %s1503_s16 = smul.u32 48, %s562_s4 }
  0x1d   : > { %s1796_s26 = sshll.u32 %s567_s25, 4  ;;  %1300 = vperm.xlu1 %1565, %v1295_v24   ;;  %v1007_v38 = vld [vmem:[%s1961_s12] sm:$0xff] }
  0x1e   : > { %s573_s24 = scalar_lea.vmem %s1976_s0, %s1796_s26  ;;  %s583_s17 = scalar_lea.vmem %s1977_s1, %s1796_s26  ;;  %v1194_v48 = vld [vmem:[%s1962_s13] sm:$0xff] }
  0x1f   : > { %v597_v4 = vld [vmem:[%s573_s24 + $0x8] sm:$0xff]  ;;  %v596_v5 = vld [vmem:[%s573_s24] sm:$0xff]  ;;  %837 = vperm.xlu0 %1564, %v834_v3   ;;  %s593_s25 = scalar_lea.vmem %s1951_s2, %s1796_s26  ;;  %s564_s24 = scalar_lea.vmem [#allocation2], %s1503_s16 }
  0x20   : > { %613 = vmatprep.subr.mxu0 %v597_v4  ;;  %v599_v8 = vld [vmem:[%s583_s17 + $0x8] sm:$0xff]  ;;  %v598_v9 = vld [vmem:[%s583_s17] sm:$0xff]  ;;  %s1504_s26 = smul.u32 768, %s1636_s21  ;;  %s1341_s27 = sshll.u32 %s564_s24, 4  ;;  %s1894_s27 = int_to_ptr.vmem [resolvable:$true] %s1341_s27 }
  0x21   : > { %614 = vmatpush1.msra.mxu0 %v596_v5  ;;  %v601_v18 = vld [vmem:[%s593_s25 + $0x8] sm:$0xff]  ;;  %v600_v20 = vld [vmem:[%s593_s25] sm:$0xff]  ;;  %1310 = vperm.xlu1 %1565, %v1297_v25   ;;  %s1903_s25 = scalar_lea.sflag [#allocation3], %s562_s4  ;;  %s1566_s17 = scalar_lea.vmem %s1894_s27, 768 }
  0x22   : > { %1467 = vmatmul.mubr.msk.f32.vlgmr.msra.gmra.mrb[0].mxu0 %vm609_vm0, %v602_v6  ;;  %689 = vmatprep.subr.mxu0 %v599_v8  ;;  %s1899_s21 = scalar_lea.hbm %s1964_s15, %s1504_s26  ;;  %p1567_p12 = scmp.ne.s32.totalorder %s1894_s27, %s1566_s17 }
  0x23   : > { %1305 = vperm.xlu0 %1564, %v1296_v7   ;;  %753 = vmatprep.mubr.f32.mxu0 %v1646_v1  ;;  %s1648_s16 = smov [#allocation2]  }
  0x24   : > { %690 = vmatpush1.msra.mxu0 %v598_v9  ;;  %p1568_p13 = pnand %p1567_p12, %p1771_p4  ;;  %s1570_s0 = sshll.u32 %s1648_s16, 4  ;;  %s1571_s0 = int_to_ptr.vmem [resolvable:$false] %s1570_s0 }
  0x25   : > { %849 = vmatprep.subr.mxu0 %v601_v18  ;;  %s1572_s1 = scalar_lea.vmem %s1571_s0, 1536  ;;  %p1573_p1 = scmp.lt.s32.totalorder %s1894_s27, %s1571_s0 }
  0x26   : > { %1468 = vmatmul.mubr.msk.f32.vlgmr.msra.gmra.mrb[2].mxu0 %vm609_vm0, %v685_v10  ;;  %p1569_p0 = pneg %p1568_p13  ;;  %p1574_p2 = scmp.lt.s32.totalorder %s1572_s1, %s1566_s17 }
  0x27   : > { %913 = vmatprep.mubr.f32.mxu0 %v1646_v1  ;;  %850 = vmatpush1.msra.mxu0 %v600_v20 }
  0x28   : > { %p1575_p3 = por %p1574_p2, %p1573_p1 }
  0x2a   : > { %1470 = vmatmul.mubr.msk.f32.vlgmr.msra.gmra.mrb[4].mxu0 %vm609_vm0, %v845_v21  ;;  %p1576_p5 = pnand %p1575_p3, %p1569_p0 }
  0x2b   : > { %987 = vmatprep.mubr.f32.mxu0 %v1646_v1 }
  0x98   : > { %v998_v41 = vpop.permute.xlu1 %997 }
  0x9a   : > { %v607_v12 = vpop.permute.xlu0 %606 }
  0x9c   : > { %v1301_v60 = vpop.permute.xlu1 %1300 }
  0x9e   : > { %v838_v29 = vpop.permute.xlu0 %837 }
  0xa0   : > { %v1311_v10 = vpop.permute.xlu1 %1310 }
  0xa2   : > { %v1306_v3 = vpop.permute.xlu0 %1305 }
  0xf5   : > { %v679_v11 = vpop.f32.mrb[0].mxu0 }
  0xf6   : > { %v681_v13 = vpop.f32.mrb[1].mxu0  ;;  %v680_v15 = vadd.f32 %v679_v11, %v607_v12 }
  0xf7   : > { %v682_v14 = vadd.f32 %v681_v13, %v607_v12 }
  0xf9   : > { %763 = vmatprep.subr.mxu1 %v682_v14  ;;  %v755_v17 = vpop.f32.mrb[2].mxu0 }
  0xfa   : > { %764 = vmatpush1.msra.mxu1 %v680_v15  ;;  %v757_v19 = vpop.f32.mrb[3].mxu0 }
  0xfb   : > { %1469 = vmatmul.mubr.msk.f32.vlgmr.msra.gmra.mrb[0].mxu1 %vm609_vm0, %v684_v16  ;;  %1111 = vmatprep.subr.mxu1 %v682_v14 }
  0xfc   : > { %1112 = vmatpush1.msra.mxu1 %v680_v15  ;;  %1175 = vmatprep.mubr.f32.mxu1 %v1646_v1 }
  0xff   : > { %1475 = vmatmul.mubr.msk.f32.vlgmr.msra.gmra.mrb[2].mxu1 %vm609_vm0, %v1004_v23 }
 0x100   : > { %1181 = vmatprep.mubr.f32.mxu1 %v1646_v1 }
 0x103   : > { %1476 = vmatmul.mubr.msk.f32.gmra.mrb[4].mxu1 %vm609_vm0, %v1005_v36 }
 0x104   : > { %1187 = vmatprep.mubr.f32.mxu1 %v1646_v1 }
 0x107   : > { %1477 = vmatmul.mubr.msk.f32.gmra.mrb[6].mxu1 %vm609_vm0, %v1006_v37 }
 0x108   : > { %1270 = vmatprep.mubr.f32.mxu1 %v1646_v1 }
 0x1ce   : > { %v829_v26 = vpop.f32.mrb[0].mxu1 }
 0x1cf   : > { %v830_v27 = vadd.f32 %v829_v26, %v755_v17  ;;  %v831_v28 = vpop.f32.mrb[1].mxu1 }
 0x1d0   : > { %v832_v30 = vadd.f32 %v831_v28, %v757_v19 }
 0x1d1   : > { %v840_v31 = vadd.f32 %v838_v29, %v830_v27 }
 0x1d2   : > { %v841_v32 = vadd.f32 %v838_v29, %v832_v30 }
 0x1d3   : > { %v842_v34 = vmax.f32 %v840_v31, 0.0 }
 0x1d4   : > { %v843_v33 = vmax.f32 %v841_v32, 0.0 }
 0x1d6   : > { %923 = vmatprep.subr.mxu0 %v843_v33 }
 0x1d7   : > { %924 = vmatpush1.msra.mxu0 %v842_v34 }
 0x1d8   : > { %1471 = vmatmul.mubr.msk.f32.vlgmr.msra.gmra.mrb[4].mxu0 %vm609_vm0, %v844_v35  ;;  %1019 = vmatprep.subr.mxu0 %v843_v33 }
 0x1d9   : > { %1020 = vmatpush1.msra.mxu0 %v842_v34  ;;  %1083 = vmatprep.mubr.f32.mxu0 %v1646_v1 }
 0x1dc   : > { %1472 = vmatmul.mubr.msk.f32.vlgmr.msra.gmra.mrb[6].mxu0 %vm609_vm0, %v1007_v38 }
 0x1dd   : > { %1089 = vmatprep.mubr.f32.mxu0 %v1646_v1 }
 0x1e0   : > { %1473 = vmatmul.mubr.msk.f32.gmra.mrb[8].mxu0 %vm609_vm0, %v1008_v39 }
 0x1e1   : > { %1095 = vmatprep.mubr.f32.mxu0 %v1646_v1 }
 0x1e4   : > { %1474 = vmatmul.mubr.msk.f32.gmra.mrb[10].mxu0 %vm609_vm0, %v1009_v40 }
 0x2ab   : > { %v989_v42 = vpop.f32.mrb[4].mxu0 }
 0x2ac   : > { %v1000_v43 = vadd.f32 %v998_v41, %v989_v42  ;;  %v991_v44 = vpop.f32.mrb[5].mxu0 }
 0x2ad   : > { %v1001_v45 = vadd.f32 %v998_v41, %v991_v44 }
 0x2ae   : > { %v1002_v47 = vmax.f32 %v1000_v43, 0.0 }
 0x2af   : > { %v1003_v46 = vmax.f32 %v1001_v45, 0.0  ;;  %v1085_v51 = vpop.f32.mrb[6].mxu0 }
 0x2b0   : > { %v1087_v52 = vpop.f32.mrb[7].mxu0 }
 0x2b1   : > { %1206 = vmatprep.subr.mxu1 %v1003_v46 }
 0x2b2   : > { %1207 = vmatpush1.msra.mxu1 %v1002_v47 }
 0x2b3   : > { %1478 = vmatmul.mubr.msk.f32.vlgmr.msra.gmra.mrb[2].mxu1 %vm609_vm0, %v1194_v48  ;;  %v1091_v53 = vpop.f32.mrb[8].mxu0 }
 0x2b4   : > { %1276 = vmatprep.mubr.f32.mxu1 %v1646_v1  ;;  %v1093_v54 = vpop.f32.mrb[9].mxu0 }
 0x2b7   : > { %1479 = vmatmul.mubr.msk.f32.gmra.mrb[4].mxu1 %vm609_vm0, %v1195_v49  ;;  %v1097_v55 = vpop.f32.mrb[10].mxu0 }
 0x2b8   : > { %1282 = vmatprep.mubr.f32.mxu1 %v1646_v1  ;;  %v1099_v56 = vpop.f32.mrb[11].mxu0 }
 0x2bb   : > { %1480 = vmatmul.mubr.msk.f32.gmra.mrb[6].mxu1 %vm609_vm0, %v1196_v50 }
 0x386   : > { %v1272_v57 = vpop.f32.mrb[2].mxu1 }
 0x387   : > { %v1489_v58 = vadd.f32 %v1272_v57, %v1085_v51  ;;  %v1274_v59 = vpop.f32.mrb[3].mxu1 }
 0x388   : > { %v1490_v61 = vadd.f32 %v1274_v59, %v1087_v52 }
 0x389   : > { %v1313_v62 = vadd.f32 %v1489_v58, %v1301_v60 }
 0x38a   : > { %v1314_v63 = vadd.f32 %v1490_v61, %v1301_v60  ;;  %v1278_v0 = vpop.f32.mrb[4].mxu1 }
 0x38b   : > { %1319 = vst [vmem:[%s564_s24] sm:$0xff] %v1313_v62  ;;  %v1491_v1 = vadd.f32 %v1278_v0, %v1091_v53  ;;  %v1280_v2 = vpop.f32.mrb[5].mxu1 }
 0x38c   : > { %1320 = vst [vmem:[%s564_s24 + $0x8] sm:$0xff] %v1314_v63  ;;  %v1492_v4 = vadd.f32 %v1280_v2, %v1093_v54 }
 0x38d   : > { %v1315_v5 = vadd.f32 %v1491_v1, %v1306_v3 }
 0x38e   : > { %v1316_v6 = vadd.f32 %v1492_v4, %v1306_v3  ;;  %v1284_v7 = vpop.f32.mrb[6].mxu1 }
 0x38f   : > { %1321 = vst [vmem:[%s564_s24 + $0x10] sm:$0xff] %v1315_v5  ;;  %v1493_v8 = vadd.f32 %v1284_v7, %v1097_v55  ;;  %v1286_v9 = vpop.f32.mrb[7].mxu1 }
 0x390   : > { %1322 = vst [vmem:[%s564_s24 + $0x18] sm:$0xff] %v1316_v6  ;;  %v1494_v11 = vadd.f32 %v1286_v9, %v1099_v56 }
 0x391   : > { %v1317_v12 = vadd.f32 %v1493_v8, %v1311_v10 }
 0x392   : > { %v1318_v13 = vadd.f32 %v1494_v11, %v1311_v10 }
 0x393   : > { %1323 = vst [vmem:[%s564_s24 + $0x20] sm:$0xff] %v1317_v12 }
 0x394   : > { %1324 = vst [vmem:[%s564_s24 + $0x28] sm:$0xff] %v1318_v13 }
 0x395   : > { %1579 = shalt.err (!%p1576_p5)
}
 0x396   : > { %s1580_s4 = scalar_lea.hbm %s1899_s21, 768  ;;  %s1584_s29 = scalar_lea.hbm %s1964_s15, 1536 }
 0x397   : > { %p1581_p6 = scmp.ne.s32.totalorder %s1899_s21, %s1580_s4  ;;  %p1585_p10 = scmp.lt.u32.totalorder %s1899_s21, %s1964_s15 }
 0x398   : > { %p1586_p11 = scmp.lt.u32.totalorder %s1584_s29, %s1580_s4  ;;  %p1588_p13 = scmp.lt.u32.totalorder %s1580_s4, %s1899_s21 }
 0x399   : > { %p1582_p7 = pnand %p1581_p6, %p1771_p4 }
 0x39a   : > { %p1587_p12 = por %p1586_p11, %p1585_p10 }
 0x39b   : > { %p1583_p9 = pneg %p1582_p7 }
 0x39c   : > { %p1589_p0 = por %p1588_p13, %p1587_p12 }
 0x39e   : > { %p1590_p1 = pnand %p1589_p0, %p1583_p9 }
 0x3a0   : > { %1593 = shalt.err (!%p1590_p1)
}
 0x3a1   : > { %s1649_s1 = smov 256   ;;  %s1650_s17 = smov 16  }
 0x3a2   : > { %1505 = dma.vmem_to_hbm [thread:$0]  (%p1771_p4), %s1894_s27, 768, %s1899_s21, %s1903_s25, %s1649_s1, %s1649_s1, %s1650_s17  }
 0x3a3 PF: > { %p1511_p2 = scmp.ge.s32.totalorder %s1644_s23, 2  ;;  %s1356_s16 = sand.u32 1, %s1624_s18  }
 0x3a4   : > { %s1357_s4 = scalar_lea.sflag [#allocation3], %s1356_s16 }
 0x3a5   : > { %p1508_p3 = pnand %p1511_p2, %p1778_p8 }
 0x3a7   : > { %1619 = dma.done.wait (!%p1508_p3), %s1357_s4, 768  }
 0x3a8   : > { %1621 = vsyncadd (!%p1508_p3), %s1357_s4, 4294966528  ;;  %s28_s23 = sadd.s32 1, %s1644_s23   ;;  %s1978_s24 = sld [smem:[#allocation7_spill]] }
 0x3a9   : > { %p25_p5 = scmp.ge.s32.totalorder %s28_s23, 4   ;;  %s1979_s21 = sld [smem:[#allocation5_spill]] }
 0x3aa   : > { %s1980_s22 = sld [smem:[#allocation6_spill]]  ;;  %s1981_s18 = smov %s1628_s19 }
 0x3ab   : > { %s1982_s19 = smov %s1632_s20  ;;  %27 = sbr.rel (!%p25_p5) target bundleno = 8 (0x8), region = 121 }
 0x3ae   : > { %s1983_s20 = smov %s1978_s24 }
 0x3b2   :  { %1362 = vsyncpa [#allocation3], 1 }
 0x3b3   :  { %1364 = vsyncpa [#allocation3 + $0x1], 1 }

</bundles_post_ra>
